<compile_context>
chip_gen: v7x
topology: tpu7x:2x2x1
jax: 0.10.0
libtpu: 0.0.40
codegen_flags: <defaults>
</compile_context>

<pallas_src>
import math

import jax
import jax.numpy as jnp
from jax.experimental import pallas as pl
from jax.experimental.pallas import tpu as pltpu


# --------------------------------------------------------------------------- #
# Kernel
# --------------------------------------------------------------------------- #
def _make_kernel(ms_num):
    """Kernel over refs: x_0..x_{ms_num-1} (TR, W), w (ms_num, W), out (TR, W)."""

    def kernel(*refs):
        x_refs = refs[:ms_num]
        w_ref = refs[ms_num]
        o_ref = refs[ms_num + 1]

        w = w_ref[...].astype(jnp.float32)                      # (ms_num, W), tiny
        # Per-m accumulation: one live input slice + one f32 accumulator.
        acc = x_refs[0][...].astype(jnp.float32) * w[0]
        for m in range(1, ms_num):
            acc += x_refs[m][...].astype(jnp.float32) * w[m]
        o_ref[...] = acc.astype(o_ref.dtype)                    # written exactly once

    return kernel


# --------------------------------------------------------------------------- #
# Tiling helpers
# --------------------------------------------------------------------------- #
def _vmem_budgets():
    """(tile_budget_bytes, vmem_limit_bytes), derived per chip generation."""
    try:
        cap = int(pltpu.get_tpu_info().vmem_capacity_bytes)
    except Exception:
        cap = 64 * 1024 * 1024                     # conservative (v7x-class)
    tile_budget = cap // 4                          # 32 MiB on v5e/v6e, 16 MiB on v7x
    vmem_limit = min(64 * 1024 * 1024, (cap * 3) // 4)   # 64 MiB v5e/v6e, 48 MiB v7x
    return tile_budget, vmem_limit


def _pick_row_tile(rows, width, ms_num, in_itemsize, out_itemsize, budget_bytes):
    """Largest sublane-aligned row tile whose double-buffered set fits the budget."""
    # Sublane packing: 8 rows for 4-byte, 16 for 2-byte, 32 for 1-byte dtypes.
    align = max(8, (8 * 4) // max(int(in_itemsize), 1))
    # Per grid step: 2x (double buffer) ms_num input tiles + 2x out tile
    # + one f32 accumulator's worth of headroom (vregs / internal scratch).
    bytes_per_row = (2 * ms_num * in_itemsize + 2 * out_itemsize + 4) * width
    max_rows = max(align, int(budget_bytes // max(bytes_per_row, 1)))
    max_rows = (max_rows // align) * align

    if rows <= max_rows:
        # Whole plane fits in one block.  If alignment allows, still split the
        # "parallel" row axis into >=2 steps so v7x megacore can shard the
        # mem-bound work across its 2 TensorCores (neutral on v5e/v6e).
        if rows >= 2 * align and rows % align == 0:
            half = ((rows // 2 + align - 1) // align) * align
            return min(half, rows)
        return rows
    return max(align, max_rows)


# --------------------------------------------------------------------------- #
# Wrapper
# --------------------------------------------------------------------------- #
@jax.jit
def _weight_attention_impl(weight, inputs):
    """inputs: tuple of ms_num arrays of shape (B, bit); weight: (ms_num, bit)."""
    ms_num = len(inputs)
    b, bit = inputs[0].shape
    lane = 128

    out_dtype = jnp.result_type(weight.dtype, *(x.dtype for x in inputs))

    # ---- lane-dense layout for the (B, bit) plane ---------------------------
    if bit % lane == 0:
        rows, width = b, bit
        xs2, w2 = list(inputs), weight
        unpack = lambda o: o
    else:
        width = (bit * lane) // math.gcd(bit, lane)          # lcm(bit, 128)
        if (b * bit) % width == 0:
            # pure row-major view: (B, bit) -> (B*bit/W, W); weight tiled to W lanes
            rows = (b * bit) // width
            xs2 = [x.reshape(rows, width) for x in inputs]
            w2 = jnp.tile(weight, (1, width // bit))          # (ms_num, W), tiny
            unpack = lambda o: o.reshape(b, bit)
        else:
            # rare fallback: native layout (block dims equal full array dims)
            rows, width = b, bit
            xs2, w2 = list(inputs), weight
            unpack = lambda o: o

    tile_budget, vmem_limit = _vmem_budgets()
    in_itemsize = jnp.dtype(xs2[0].dtype).itemsize
    out_itemsize = jnp.dtype(out_dtype).itemsize
    tr = _pick_row_tile(rows, width, ms_num, in_itemsize, out_itemsize, tile_budget)
    grid = (pl.cdiv(rows, tr),)

    x_specs = [pl.BlockSpec((tr, width), lambda i: (i, 0)) for _ in range(ms_num)]
    w_spec = pl.BlockSpec((ms_num, width), lambda i: (0, 0))   # small, resident

    out = pl.pallas_call(
        _make_kernel(ms_num),
        out_shape=jax.ShapeDtypeStruct((rows, width), out_dtype),
        grid_spec=pltpu.PrefetchScalarGridSpec(
            num_scalar_prefetch=0,
            grid=grid,
            in_specs=x_specs + [w_spec],
            out_specs=pl.BlockSpec((tr, width), lambda i: (i, 0)),
        ),
        compiler_params=pltpu.CompilerParams(
            # single row-tile axis; "parallel" lets v7x shard across its 2 TCs.
            dimension_semantics=("parallel",),
            vmem_limit_bytes=vmem_limit,
        ),
    )(*xs2, w2)

    return unpack(out)


def weight_attention(weight, *inputs):
    """Mirrors WeightAttention.forward(*inputs) for inputs of shape (B, bit)."""
    out = _weight_attention_impl(weight, tuple(inputs))
    # torch .squeeze() removes all size-1 dims
    return jnp.squeeze(out)


# --------------------------------------------------------------------------- #
# Self-test
# --------------------------------------------------------------------------- #
if __name__ == "__main__":
    def ref_weight_attention(weight, xs):
        return jnp.squeeze(jnp.sum(xs * weight[:, None, :], axis=0))

    key = jax.random.PRNGKey(0)

    # --- case 1: bit divides into the lane fold (32 -> width 128) -----------
    ms_num, bit, batch = 4, 32, 8
    k_w, k_x, key = jax.random.split(key, 3)
    # nn.init.normal_(weight, mean=0.25, std=1/bit), deterministic here.
    weight = 0.25 + (1.0 / bit) * jax.random.normal(k_w, (ms_num, bit), jnp.float32)
    xs = jax.random.normal(k_x, (ms_num, batch, bit), jnp.float32)
    out = jax.block_until_ready(
        weight_attention(weight, *[xs[m] for m in range(ms_num)])
    )
    ref = ref_weight_attention(weight, xs)
    assert out.shape == ref.shape
    assert jnp.allclose(out, ref, atol=1e-5, rtol=1e-5)

    # --- case 2: lcm fold path (bit=24 -> width 384, rows = B*bit/384) ------
    bit2, batch2 = 24, 32
    k_w2, k_x2, key = jax.random.split(key, 3)
    weight2 = 0.25 + (1.0 / bit2) * jax.random.normal(k_w2, (ms_num, bit2), jnp.float32)
    xs2 = jax.random.normal(k_x2, (ms_num, batch2, bit2), jnp.float32)
    out2 = jax.block_until_ready(
        weight_attention(weight2, *[xs2[m] for m in range(ms_num)])
    )
    ref2 = ref_weight_attention(weight2, xs2)
    assert out2.shape == ref2.shape
    assert jnp.allclose(out2, ref2, atol=1e-5, rtol=1e-5)

    # --- case 3: non-foldable fallback (bit=24, batch=8 -> native layout) ---
    bit3, batch3 = 24, 8
    k_w3, k_x3, key = jax.random.split(key, 3)
    weight3 = 0.25 + (1.0 / bit3) * jax.random.normal(k_w3, (ms_num, bit3), jnp.float32)
    xs3 = jax.random.normal(k_x3, (ms_num, batch3, bit3), jnp.float32)
    out3 = jax.block_until_ready(
        weight_attention(weight3, *[xs3[m] for m in range(ms_num)])
    )
    ref3 = ref_weight_attention(weight3, xs3)
    assert out3.shape == ref3.shape
    assert jnp.allclose(out3, ref3, atol=1e-5, rtol=1e-5)

    print("KERNEL_OK")
</pallas_src>

<mosaic_0001>
module attributes {stable_mosaic.version = 11 : i64} {
  func.func @kernel(%arg0: i32, %arg1: memref<2x128xf32, #tpu.memory_space<vmem>>, %arg2: memref<2x128xf32, #tpu.memory_space<vmem>>, %arg3: memref<2x128xf32, #tpu.memory_space<vmem>>, %arg4: memref<2x128xf32, #tpu.memory_space<vmem>>, %arg5: memref<4x128xf32, #tpu.memory_space<vmem>>, %arg6: memref<2x128xf32, #tpu.memory_space<vmem>>) attributes {dimension_semantics = [#tpu.dimension_semantics<parallel>], iteration_bounds = array<i64: 1>, scalar_prefetch = 0 : i64, scratch_operands = 0 : i64, tpu.core_type = #tpu.core_type<tc>, window_params = [{transform_indices = @transform_0, window_bounds = array<i64: 2, 128>}, {transform_indices = @transform_1, window_bounds = array<i64: 2, 128>}, {transform_indices = @transform_2, window_bounds = array<i64: 2, 128>}, {transform_indices = @transform_3, window_bounds = array<i64: 2, 128>}, {pipeline_mode = #tpu.pipeline_mode<synchronous>, transform_indices = @transform_4, window_bounds = array<i64: 4, 128>}, {transform_indices = @transform_5, window_bounds = array<i64: 2, 128>}]} {
    %c0 = arith.constant 0 : index
    %c0_0 = arith.constant 0 : index
    %0 = vector.load %arg5[%c0, %c0_0] : memref<4x128xf32, #tpu.memory_space<vmem>>, vector<4x128xf32>
    %c0_1 = arith.constant 0 : index
    %c0_2 = arith.constant 0 : index
    %1 = vector.load %arg1[%c0_1, %c0_2] : memref<2x128xf32, #tpu.memory_space<vmem>>, vector<2x128xf32>
    %2 = vector.extract_strided_slice %0 {offsets = [0, 0], sizes = [1, 128], strides = [1, 1]} : vector<4x128xf32> to vector<1x128xf32>
    %3 = vector.shape_cast %2 : vector<1x128xf32> to vector<128xf32>
    %4 = vector.shape_cast %3 : vector<128xf32> to vector<1x128xf32>
    %5 = vector.broadcast %4 : vector<1x128xf32> to vector<2x128xf32>
    %6 = arith.mulf %1, %5 : vector<2x128xf32>
    %c0_3 = arith.constant 0 : index
    %c0_4 = arith.constant 0 : index
    %7 = vector.load %arg2[%c0_3, %c0_4] : memref<2x128xf32, #tpu.memory_space<vmem>>, vector<2x128xf32>
    %8 = vector.extract_strided_slice %0 {offsets = [1, 0], sizes = [1, 128], strides = [1, 1]} : vector<4x128xf32> to vector<1x128xf32>
    %9 = vector.shape_cast %8 : vector<1x128xf32> to vector<128xf32>
    %10 = vector.shape_cast %9 : vector<128xf32> to vector<1x128xf32>
    %11 = vector.broadcast %10 : vector<1x128xf32> to vector<2x128xf32>
    %12 = arith.mulf %7, %11 : vector<2x128xf32>
    %13 = arith.addf %6, %12 : vector<2x128xf32>
    %c0_5 = arith.constant 0 : index
    %c0_6 = arith.constant 0 : index
    %14 = vector.load %arg3[%c0_5, %c0_6] : memref<2x128xf32, #tpu.memory_space<vmem>>, vector<2x128xf32>
    %15 = vector.extract_strided_slice %0 {offsets = [2, 0], sizes = [1, 128], strides = [1, 1]} : vector<4x128xf32> to vector<1x128xf32>
    %16 = vector.shape_cast %15 : vector<1x128xf32> to vector<128xf32>
    %17 = vector.shape_cast %16 : vector<128xf32> to vector<1x128xf32>
    %18 = vector.broadcast %17 : vector<1x128xf32> to vector<2x128xf32>
    %19 = arith.mulf %14, %18 : vector<2x128xf32>
    %20 = arith.addf %13, %19 : vector<2x128xf32>
    %c0_7 = arith.constant 0 : index
    %c0_8 = arith.constant 0 : index
    %21 = vector.load %arg4[%c0_7, %c0_8] : memref<2x128xf32, #tpu.memory_space<vmem>>, vector<2x128xf32>
    %22 = vector.extract_strided_slice %0 {offsets = [3, 0], sizes = [1, 128], strides = [1, 1]} : vector<4x128xf32> to vector<1x128xf32>
    %23 = vector.shape_cast %22 : vector<1x128xf32> to vector<128xf32>
    %24 = vector.shape_cast %23 : vector<128xf32> to vector<1x128xf32>
    %25 = vector.broadcast %24 : vector<1x128xf32> to vector<2x128xf32>
    %26 = arith.mulf %21, %25 : vector<2x128xf32>
    %27 = arith.addf %20, %26 : vector<2x128xf32>
    %c0_9 = arith.constant 0 : index
    %c0_10 = arith.constant 0 : index
    %28 = vector.load %arg6[%c0_9, %c0_10] : memref<2x128xf32, #tpu.memory_space<vmem>>, vector<2x128xf32>
    tpu.vector_store %arg6[%c0_9, %c0_10], %27 {strides = array<i32>} : memref<2x128xf32, #tpu.memory_space<vmem>>, vector<2x128xf32>,
    return
  }
  func.func @transform_0(%arg0: i32) -> (i32, i32) {
    %c0_i32 = arith.constant 0 : i32
    %c0_i32_0 = arith.constant 0 : i32
    return %arg0, %c0_i32 : i32, i32
  }
  func.func @transform_1(%arg0: i32) -> (i32, i32) {
    %c0_i32 = arith.constant 0 : i32
    %c0_i32_0 = arith.constant 0 : i32
    return %arg0, %c0_i32 : i32, i32
  }
  func.func @transform_2(%arg0: i32) -> (i32, i32) {
    %c0_i32 = arith.constant 0 : i32
    %c0_i32_0 = arith.constant 0 : i32
    return %arg0, %c0_i32 : i32, i32
  }
  func.func @transform_3(%arg0: i32) -> (i32, i32) {
    %c0_i32 = arith.constant 0 : i32
    %c0_i32_0 = arith.constant 0 : i32
    return %arg0, %c0_i32 : i32, i32
  }
  func.func @transform_4(%arg0: i32) -> (i32, i32) {
    %c0_i32 = arith.constant 0 : i32
    %c0_i32_0 = arith.constant 0 : i32
    %c0_i32_1 = arith.constant 0 : i32
    return %c0_i32, %c0_i32_0 : i32, i32
  }
  func.func @transform_5(%arg0: i32) -> (i32, i32) {
    %c0_i32 = arith.constant 0 : i32
    %c0_i32_0 = arith.constant 0 : i32
    return %arg0, %c0_i32 : i32, i32
  }
}

</mosaic_0001>

<bundles_post_ra>
// kernel: tile.9
= control target key start
LH: loop header
LB: loop body
LE: loop exit
PB: predicated region body
PF: predicated region fallthrough
CT: control target
= control target key end

     0   :  { %vm21_vm0 = vcmask 261120   ;;  %s56_s14 = smov 32   ;;  %s57_s15 = smov 64   ;;  %vm27_vm1 = vcmask 1048320   ;;  %vm33_vm2 = vcmask 785920   ;;  %vm39_vm3 = vcmask 523520   ;;  %s83_s0 = inlined_call_operand.vmem [shape: f32[4,4,32], index: 0, kind: input, shape index: {}]   ;;  %s84_s1 = inlined_call_operand.vmem [shape: f32[4,128], index: 1, kind: output, shape index: {}]  }
   0x1   :  { %v49_v0 = vld [vmem:[%s83_s0 + $0xc] sm:$0xf]  ;;  %v50_v1 = vld [vmem:[%s83_s0 + $0x8] sm:$0xf]  ;;  %v51_v2 = vld [vmem:[%s83_s0 + $0x4] sm:$0xf] }
   0x2   :  { %8 = vst [vmem:[#allocation1 + $0x18] sm:$0xf] %v49_v0  ;;  %13 = vst [vmem:[#allocation1 + $0x10] sm:$0xf] %v50_v1  ;;  %v18_v3 = vld [vmem:[%s83_s0] sm:$0xf] }
   0x3   :  { %17 = vst [vmem:[#allocation1 + $0x8] sm:$0xf] %v51_v2  ;;  %19 = vst [vmem:[#allocation1] sm:$0xf] %v18_v3  ;;  %s55_s0 = smov 96  }
   0xa   :  { %v24_v4 = vld [vmem:[#allocation1 + $0x3] ss:$8 sm:$0xf]   ;;  %v36_v5 = vld [vmem:[#allocation1 + $0x1] ss:$8 sm:$0xf]  }
   0xb   :  { %25 = vrot.lane.b32.xlu0 %v24_v4, %s55_s0  ;;  %v20_v6 = vld [vmem:[#allocation1] ss:$8 sm:$0xf]   ;;  %v30_v7 = vld [vmem:[#allocation1 + $0x2] ss:$8 sm:$0xf]   ;;  %37 = vrot.lane.b32.xlu1 %v36_v5, %s56_s14 }
   0xc   :  { %22 = vst.msk [vmem:[#allocation0] sm:$0xf] %vm21_vm0, %v20_v6  }
   0xf   :  { %31 = vrot.lane.b32.xlu0 %v30_v7, %s57_s15 }
  0x7d   :  { %v26_v8 = vpop.permute.xlu0 %25   ;;  %v38_v9 = vpop.permute.xlu1 %37  }
  0x7e   :  { %28 = vst.msk [vmem:[#allocation0] sm:$0xf] %vm27_vm1, %v26_v8  }
  0x81   :  { %v32_v10 = vpop.permute.xlu0 %31  }
  0x82   :  { %34 = vst.msk [vmem:[#allocation0] sm:$0xf] %vm33_vm2, %v32_v10  }
  0x83   :  { %40 = vst.msk [vmem:[#allocation0] sm:$0xf] %vm39_vm3, %v38_v9  }
  0x8a   :  { %v44_v11 = vld [vmem:[#allocation0] sm:$0xf] }
  0x8b   :  { %46 = vst [vmem:[%s84_s1] sm:$0xf] %v44_v11 }

// kernel: _weight_attention_impl.1
= control target key start
LH: loop header
LB: loop body
LE: loop exit
PB: predicated region body
PF: predicated region fallthrough
CT: control target
= control target key end

     0   :  { %v22_v0 = vlaneseq  ;;  %s101_s4 = inlined_call_operand.vmem [shape: f32[4,128], index: 4, kind: input, shape index: {}]   ;;  %s102_s0 = inlined_call_operand.vmem [shape: f32[2,128], index: 0, kind: input, shape index: {}]   ;;  %s103_s1 = inlined_call_operand.vmem [shape: f32[2,128], index: 1, kind: input, shape index: {}]   ;;  %s104_s2 = inlined_call_operand.vmem [shape: f32[2,128], index: 2, kind: input, shape index: {}]   ;;  %s105_s3 = inlined_call_operand.vmem [shape: f32[2,128], index: 3, kind: input, shape index: {}]   ;;  %s106_s5 = inlined_call_operand.vmem [shape: f32[2,128], index: 5, kind: output, shape index: {}]  }
   0x1   :  { %v20_v2 = vld [vmem:[%s101_s4] sm:$0xf] }
   0x2   :  { %v23_v1 = vshrl.u32 %v22_v0, 7  ;;  %v21_v7 = vld [vmem:[%s102_s0] sm:$0x3] }
   0x3   :  { %v27_v8 = vld [vmem:[%s103_s1] sm:$0x3] }
   0x4   :  { %v24_v3 = vsub.s32 0, %v23_v1  ;;  %v30_v4 = vsub.s32 1, %v23_v1  ;;  %v37_v5 = vsub.s32 2, %v23_v1  ;;  %v44_v6 = vsub.s32 3, %v23_v1  ;;  %v34_v9 = vld [vmem:[%s104_s2] sm:$0x3] }
   0x5   :  { %v41_v14 = vld [vmem:[%s105_s3] sm:$0x3] }
   0x6   :  { %v25_v10 = vrot.slane %v20_v2, %v24_v3  ;;  %v31_v11 = vrot.slane %v20_v2, %v30_v4  ;;  %v38_v12 = vrot.slane %v20_v2, %v37_v5  ;;  %v45_v13 = vrot.slane %v20_v2, %v44_v6 }
   0x8   :  { %v26_v15 = vmul.f32 %v25_v10, %v21_v7  ;;  %v32_v16 = vmul.f32 %v31_v11, %v27_v8  ;;  %v39_v17 = vmul.f32 %v38_v12, %v34_v9  ;;  %v46_v19 = vmul.f32 %v45_v13, %v41_v14 }
   0xa   :  { %v33_v18 = vadd.f32 %v32_v16, %v26_v15 }
   0xc   :  { %v40_v20 = vadd.f32 %v39_v17, %v33_v18 }
   0xe   :  { %v47_v21 = vadd.f32 %v46_v19, %v40_v20 }
  0x10   :  { %48 = vst [vmem:[%s106_s5] sm:$0x3] %v47_v21 }

</bundles_post_ra>
